<compile_context>
chip_gen: v5e
topology: v5e:2x2
jax: 0.10.0
libtpu: 0.0.40
codegen_flags: <defaults>
</compile_context>

<pallas_src>
import functools

import jax
import jax.numpy as jnp
from jax import lax
from jax.experimental import pallas as pl
from jax.experimental.pallas import tpu as pltpu


def _round_up(x, m):
    return ((x + m - 1) // m) * m


def _vmem_capacity_bytes():
    try:
        return int(pltpu.get_tpu_info().vmem_capacity_bytes)
    except Exception:
        return 64 * 1024 * 1024   # conservative default (v7x per-TC VMEM)


def _fast_recip(x):
    # EUP approximate reciprocal refined with one Newton-Raphson step:
    # ~f32 accuracy while the heavy lifting stays off the VALU.
    r = pl.reciprocal(x, approx=True)
    return r * (2.0 - x * r)


def _resident_spec(block_shape, index_map):
    # Resident inputs (constant index_map) gain nothing from double buffering;
    # request a single buffer when this jax version supports pipeline_mode.
    if hasattr(pl, "Buffered"):
        try:
            return pl.BlockSpec(block_shape, index_map,
                                pipeline_mode=pl.Buffered(1))
        except TypeError:
            pass
    return pl.BlockSpec(block_shape, index_map)


def _clustering_kernel(f_ref, p_ref, psq_ref, o_ref, *, use_bf16_matmul):
    f = f_ref[...].astype(jnp.float32)          # (TILE_N, D)
    p = p_ref[...].astype(jnp.float32)          # (K, D), resident across tiles

    # ||f - p||^2 = ||f||^2 + ||p||^2 - 2 f.p^T ; cross term on the MXU.
    f_sq = jnp.sum(f * f, axis=-1, keepdims=True)             # (TILE_N, 1)
    if use_bf16_matmul:
        cross = lax.dot_general(
            f.astype(jnp.bfloat16), p.astype(jnp.bfloat16),
            (((1,), (1,)), ((), ())),
            preferred_element_type=jnp.float32)                # (TILE_N, K)
    else:
        cross = lax.dot_general(
            f, p, (((1,), (1,)), ((), ())),
            preferred_element_type=jnp.float32)                # (TILE_N, K)
    sq_dist = jnp.maximum(f_sq + psq_ref[...] - 2.0 * cross, 0.0)
    dist = jnp.sqrt(sq_dist)

    sim = _fast_recip(1.0 + dist)               # torch.pow(1 + norm, -1), in (0, 1]

    # Softmax over the (true-width) K axis; sim <= 1 so no max pass is needed.
    e = jnp.exp(sim)
    denom = jnp.sum(e, axis=-1, keepdims=True)
    o_ref[...] = (e * _fast_recip(denom)).astype(o_ref.dtype)


def _choose_tile_n(n, d, k, in_bytes, out_bytes, budget_bytes):
    # Resident block (prototypes + ||p||^2); assume 2 buffers so the estimate
    # stays safe if the single-buffer request falls back to the default.
    resident = 2 * k * d * in_bytes + 2 * _round_up(k, 128) * 4 * 8
    # Per feature-row bytes: double-buffered input and output tiles plus the
    # f32 temporaries (upcast features, score rows) the body materialises.
    per_row = 2 * d * in_bytes + 2 * k * out_bytes + d * 4 + 2 * k * 4
    avail = max(budget_bytes - resident, 8 * per_row)
    tile = avail // per_row
    tile = min(tile, 1024)                       # grid-step-overhead sweet spot
    # Keep >= ~8 grid steps when N allows it: exposes input/output pipelining
    # and gives v7x's second TensorCore a "parallel" axis to shard.
    tile = min(tile, max(8, _round_up(pl.cdiv(n, 8), 8)))
    return max(8, (tile // 8) * 8)               # sublane multiple


@functools.partial(
    jax.jit, static_argnames=("tile_n", "out_dtype", "use_bf16_matmul"))
def clustering_distribution(features, prototypes, tile_n=None, out_dtype=None,
                            use_bf16_matmul=False):
    """features: (N, D), prototypes: (K, D) -> softmax distribution (N, K)."""
    n, d = features.shape
    k, dp = prototypes.shape
    assert d == dp, "feature dim mismatch"

    out_dtype = features.dtype if out_dtype is None else out_dtype
    in_bytes = features.dtype.itemsize
    out_bytes = jnp.dtype(out_dtype).itemsize

    vmem_cap = _vmem_capacity_bytes()
    if tile_n is None:
        tile_n = _choose_tile_n(n, d, k, in_bytes, out_bytes,
                                budget_bytes=int(0.6 * vmem_cap))

    # Prototype squared norms hoisted out of the per-tile body (computed once
    # per call instead of once per grid step); prototypes are tiny vs features.
    p_sq = jnp.sum(prototypes.astype(jnp.float32) ** 2, axis=-1)[None, :]  # (1, K)

    grid = (pl.cdiv(n, tile_n),)
    kernel = functools.partial(_clustering_kernel,
                               use_bf16_matmul=use_bf16_matmul)

    return pl.pallas_call(
        kernel,
        out_shape=jax.ShapeDtypeStruct((n, k), out_dtype),
        grid=grid,
        in_specs=[
            pl.BlockSpec((tile_n, d), lambda i: (i, 0)),   # features: tiled on N
            _resident_spec((k, d), lambda i: (0, 0)),      # prototypes: resident
            _resident_spec((1, k), lambda i: (0, 0)),      # ||p||^2: resident
        ],
        out_specs=pl.BlockSpec((tile_n, k), lambda i: (i, 0)),
        compiler_params=pltpu.CompilerParams(
            dimension_semantics=("parallel",),             # v7x: 2 TensorCores
            vmem_limit_bytes=int(0.8 * vmem_cap),          # ~102 MiB v5e/v6e, ~51 MiB v7x
        ),
    )(features, prototypes, p_sq)


def _reference(features, prototypes):
    # Pure-JAX reference mirroring the PyTorch loop.
    diff = (features[:, None, :].astype(jnp.float32)
            - prototypes[None, :, :].astype(jnp.float32))     # (N, K, D)
    dist = jnp.sqrt(jnp.sum(diff * diff, axis=-1))            # (N, K)
    sim = 1.0 / (1.0 + dist)
    return jax.nn.softmax(sim, axis=1)


if __name__ == "__main__":
    key = jax.random.PRNGKey(0)
    k1, k2 = jax.random.split(key)

    N, K, D = 8, 4, 32   # N features, K prototypes, hidden dim D
    features = jax.random.normal(k1, (N, D), dtype=jnp.float32)
    prototypes = jax.random.normal(k2, (K, D), dtype=jnp.float32)

    out = clustering_distribution(features, prototypes)
    out = jax.block_until_ready(out)

    ref = _reference(features, prototypes)
    assert out.shape == (N, K)
    assert out.dtype == features.dtype
    assert jnp.allclose(out, ref, atol=1e-5, rtol=1e-5), "mismatch vs reference"
    assert jnp.allclose(jnp.sum(out, axis=1), 1.0, atol=1e-5), "rows must sum to 1"

    print("KERNEL_OK")
</pallas_src>

<mosaic_0001>
module attributes {stable_mosaic.version = 11 : i64} {
  func.func @_clustering_kernel(%arg0: i32, %arg1: memref<8x32xf32, #tpu.memory_space<vmem>>, %arg2: memref<4x32xf32, #tpu.memory_space<vmem>>, %arg3: memref<1x4xf32, #tpu.memory_space<vmem>>, %arg4: memref<8x4xf32, #tpu.memory_space<vmem>>) attributes {dimension_semantics = [#tpu.dimension_semantics<parallel>], iteration_bounds = array<i64: 1>, scalar_prefetch = 0 : i64, scratch_operands = 0 : i64, tpu.core_type = #tpu.core_type<tc>, window_params = [{transform_indices = @transform_0, window_bounds = array<i64: 8, 32>}, {pipeline_mode = #tpu.pipeline_mode<synchronous>, transform_indices = @transform_1, window_bounds = array<i64: 4, 32>}, {pipeline_mode = #tpu.pipeline_mode<synchronous>, transform_indices = @transform_2, window_bounds = array<i64: 1, 4>}, {transform_indices = @transform_3, window_bounds = array<i64: 8, 4>}]} {
    %c0 = arith.constant 0 : index
    %c0_0 = arith.constant 0 : index
    %0 = vector.load %arg1[%c0, %c0_0] : memref<8x32xf32, #tpu.memory_space<vmem>>, vector<8x32xf32>
    %c0_1 = arith.constant 0 : index
    %c0_2 = arith.constant 0 : index
    %1 = vector.load %arg2[%c0_1, %c0_2] : memref<4x32xf32, #tpu.memory_space<vmem>>, vector<4x32xf32>
    %2 = arith.mulf %0, %0 : vector<8x32xf32>
    %cst = arith.constant dense<0.000000e+00> : vector<8xf32>
    %3 = vector.multi_reduction <add>, %2, %cst [1] : vector<8x32xf32> to vector<8xf32>
    %4 = vector.shape_cast %3 : vector<8xf32> to vector<8x1xf32>
    %cst_3 = arith.constant dense<0.000000e+00> : vector<8x4xf32>
    %5 = tpu.matmul %0, %1, %cst_3 {dimension_numbers = #tpu.dot_dimension_numbers<[1], [1], [0], [0], [0, 0, 1, 0], [], []>} : vector<8x32xf32>, vector<4x32xf32>, vector<8x4xf32> -> vector<8x4xf32>
    %c0_4 = arith.constant 0 : index
    %c0_5 = arith.constant 0 : index
    %6 = vector.load %arg3[%c0_4, %c0_5] : memref<1x4xf32, #tpu.memory_space<vmem>>, vector<1x4xf32>
    %7 = vector.broadcast %4 : vector<8x1xf32> to vector<8x4xf32>
    %8 = vector.broadcast %6 : vector<1x4xf32> to vector<8x4xf32>
    %9 = arith.addf %7, %8 : vector<8x4xf32>
    %cst_6 = arith.constant 2.000000e+00 : f32
    %10 = vector.broadcast %cst_6 : f32 to vector<8x4xf32>
    %11 = arith.mulf %10, %5 : vector<8x4xf32>
    %12 = arith.subf %9, %11 : vector<8x4xf32>
    %cst_7 = arith.constant 0.000000e+00 : f32
    %13 = vector.broadcast %cst_7 : f32 to vector<8x4xf32>
    %14 = arith.maximumf %12, %13 : vector<8x4xf32>
    %15 = math.sqrt %14 : vector<8x4xf32>
    %cst_8 = arith.constant 1.000000e+00 : f32
    %16 = vector.broadcast %cst_8 : f32 to vector<8x4xf32>
    %17 = arith.addf %16, %15 : vector<8x4xf32>
    %18 = tpu.reciprocal %17 {approx = true} : vector<8x4xf32> -> vector<8x4xf32>
    %19 = arith.mulf %17, %18 : vector<8x4xf32>
    %cst_9 = arith.constant 2.000000e+00 : f32
    %20 = vector.broadcast %cst_9 : f32 to vector<8x4xf32>
    %21 = arith.subf %20, %19 : vector<8x4xf32>
    %22 = arith.mulf %18, %21 : vector<8x4xf32>
    %23 = math.exp %22 : vector<8x4xf32>
    %cst_10 = arith.constant dense<0.000000e+00> : vector<8xf32>
    %24 = vector.multi_reduction <add>, %23, %cst_10 [1] : vector<8x4xf32> to vector<8xf32>
    %25 = vector.shape_cast %24 : vector<8xf32> to vector<8x1xf32>
    %26 = tpu.reciprocal %25 {approx = true} : vector<8x1xf32> -> vector<8x1xf32>
    %27 = arith.mulf %25, %26 : vector<8x1xf32>
    %cst_11 = arith.constant 2.000000e+00 : f32
    %28 = vector.broadcast %cst_11 : f32 to vector<8x1xf32>
    %29 = arith.subf %28, %27 : vector<8x1xf32>
    %30 = arith.mulf %26, %29 : vector<8x1xf32>
    %31 = vector.broadcast %30 : vector<8x1xf32> to vector<8x4xf32>
    %32 = arith.mulf %23, %31 : vector<8x4xf32>
    %c0_12 = arith.constant 0 : index
    %c0_13 = arith.constant 0 : index
    %33 = vector.load %arg4[%c0_12, %c0_13] : memref<8x4xf32, #tpu.memory_space<vmem>>, vector<8x4xf32>
    tpu.vector_store %arg4[%c0_12, %c0_13], %32 {strides = array<i32>} : memref<8x4xf32, #tpu.memory_space<vmem>>, vector<8x4xf32>,
    return
  }
  func.func @transform_0(%arg0: i32) -> (i32, i32) {
    %c0_i32 = arith.constant 0 : i32
    %c0_i32_0 = arith.constant 0 : i32
    return %arg0, %c0_i32 : i32, i32
  }
  func.func @transform_1(%arg0: i32) -> (i32, i32) {
    %c0_i32 = arith.constant 0 : i32
    %c0_i32_0 = arith.constant 0 : i32
    %c0_i32_1 = arith.constant 0 : i32
    return %c0_i32, %c0_i32_0 : i32, i32
  }
  func.func @transform_2(%arg0: i32) -> (i32, i32) {
    %c0_i32 = arith.constant 0 : i32
    %c0_i32_0 = arith.constant 0 : i32
    %c0_i32_1 = arith.constant 0 : i32
    return %c0_i32, %c0_i32_0 : i32, i32
  }
  func.func @transform_3(%arg0: i32) -> (i32, i32) {
    %c0_i32 = arith.constant 0 : i32
    %c0_i32_0 = arith.constant 0 : i32
    return %arg0, %c0_i32 : i32, i32
  }
}

</mosaic_0001>

<bundles_post_ra>
// kernel: clustering_distribution.1
= control target key start
LH: loop header
LB: loop body
LE: loop exit
PB: predicated region body
PF: predicated region fallthrough
CT: control target
= control target key end

     0   :  { %8 = vsyncpa [#allocation3], 0  ;;  %s141_s15 = smov [#allocation2]   ;;  %s174_s0 = inlined_call_operand.hbm [shape: f32[8,32], index: 0, kind: input, shape index: {}]   ;;  %s175_s1 = inlined_call_operand.vmem [shape: f32[4,32], index: 1, kind: input, shape index: {}]   ;;  %s176_s2 = inlined_call_operand.vmem [shape: f32[1,4], index: 2, kind: input, shape index: {}]   ;;  %s177_s3 = inlined_call_operand.vmem [shape: f32[8,4], index: 3, kind: output, shape index: {}]  }
   0x1   :  { %s14_s14 = sshll.u32 %s174_s0, 4  ;;  %s16_s16 = sshll.u32 %s141_s15, 4  ;;  %s15_s14 = int_to_ptr.hbm [resolvable:$true] %s14_s14  ;;  %s17_s16 = int_to_ptr.vmem [resolvable:$true] %s16_s16 }
   0x2   :  { %19 = dma.hbm_to_vmem [thread:$0]  %s15_s14, 128, %s17_s16, [#allocation3]  }
   0x3   :  { %139 = dma.done.wait [#allocation3], 128  }
   0x4   :  { %140 = vsyncadd [#allocation3], 4294967168  ;;  %vm31_vm0 = vcmask 261120   ;;  %v29_v0 = vld [vmem:[%s175_s1] sm:$0xf]  ;;  %vm88_vm3 = vcmask 31744  }
   0x5   :  { %v28_v1 = vld [vmem:[#allocation2] sm:$0xff]  ;;  %103 = vmatpush.xpose.msk.msra.mxu0 %vm31_vm0, %v29_v0 }
   0x6   :  { %v30_v2 = vmul.f32 %v28_v1, %v28_v1  ;;  %v106_v4 = vld [vmem:[%s176_s2] ss:$0 sm:$0xff] }
   0x8   :  { %v32_v3 = vsel %vm31_vm0, %v30_v2, 0.0  ;;  %104 = vmatmul.msk.f32.vlgmr.msra.gmra.mxu0 %vm31_vm0, %v28_v1 }
   0x9   :  { %33 = vadd.xlane.f32.xlu0 %v32_v3 }
  0x7c   :  { %v34_v5 = vpop.xlane.xlu0 %33 }
  0x7d   :  { %v65_v6 = vadd.f32 %v106_v4, %v34_v5 }
  0x85   :  { %v58_v7 = vpop.f32.mrf.mxu0 }
  0x86   :  { %v66_v8 = vmul.f32 2.0, %v58_v7 }
  0x88   :  { %v67_v9 = vsub.f32 %v65_v6, %v66_v8 }
  0x8a   :  { %v68_v10 = vmax.f32 %v67_v9, 0.0 }
  0x8c   :  { %107 = vrsqrt.f32 %v68_v10  ;;  %vm76_vm1 = vcmp.eq.f32.partialorder %v68_v10, inf  ;;  %v79_v18 = vand.u32 2147483648, %v68_v10  ;;  %vm78_vm2 = vcmp.eq.f32.partialorder %v68_v10, 0.0 }
  0x92   :  { %v108_v11 = vpop.eup %107 }
  0x93   :  { %v70_v12 = vmul.f32 %v108_v11, %v68_v10 }
  0x95   :  { %v71_v13 = vmul.f32 %v108_v11, %v70_v12 }
  0x97   :  { %v72_v14 = vmul.f32 0.5, %v71_v13 }
  0x99   :  { %v73_v15 = vsub.f32 1.5, %v72_v14 }
  0x9b   :  { %v74_v16 = vmul.f32 %v108_v11, %v73_v15 }
  0x9d   :  { %v75_v17 = vmul.f32 %v74_v16, %v68_v10 }
  0x9f   :  { %v77_v19 = vsel %vm76_vm1, %v68_v10, %v75_v17 }
  0xa0   :  { %v80_v20 = vsel %vm78_vm2, %v79_v18, %v77_v19 }
  0xa1   :  { %v81_v21 = vadd.f32 1.0, %v80_v20 }
  0xa3   :  { %109 = vrcp.f32 %v81_v21 }
  0xa9   :  { %v110_v22 = vpop.eup %109 }
  0xaa   :  { %v83_v23 = vmul.f32 %v110_v22, %v81_v21 }
  0xac   :  { %v84_v24 = vsub.f32 2.0, %v83_v23 }
  0xae   :  { %v85_v25 = vmul.f32 %v110_v22, %v84_v24 }
  0xb0   :  { %v86_v26 = vmul.f32 1.442695, %v85_v25 }
  0xb2   :  { %111 = vpow2.f32 %v86_v26 }
  0xb8   :  { %v112_v27 = vpop.eup %111 }
  0xb9   :  { %v89_v28 = vsel %vm88_vm3, %v112_v27, 0.0 }
  0xba   :  { %90 = vadd.xlane.f32.xlu0 %v89_v28 }
 0x12d   :  { %v91_v29 = vpop.xlane.xlu0 %90 }
 0x12e   :  { %113 = vrcp.f32 %v91_v29 }
 0x134   :  { %v114_v30 = vpop.eup %113 }
 0x135   :  { %v93_v31 = vmul.f32 %v114_v30, %v91_v29 }
 0x137   :  { %v94_v32 = vsub.f32 2.0, %v93_v31 }
 0x139   :  { %v95_v33 = vmul.f32 %v114_v30, %v94_v32 }
 0x13b   :  { %v96_v34 = vmul.f32 %v112_v27, %v95_v33 }
 0x13d   :  { %97 = vst.msk [vmem:[%s177_s3] sm:$0xff] %vm88_vm3, %v96_v34 }
 0x13e   :  { %102 = vsyncpa [#allocation3], 1 }

</bundles_post_ra>
